<compile_context>
chip_gen: v7x
topology: tpu7x:2x2x1
jax: 0.10.0
libtpu: 0.0.40
codegen_flags: <defaults>
</compile_context>

<pallas_src>
import jax
import jax.numpy as jnp
from jax import lax
from jax.experimental import pallas as pl
from jax.experimental.pallas import tpu as pltpu

HIDDEN = 256
LN_EPS = 1e-5
NEG_SLOPE = 0.01
MAX_BLOCK_ROWS = 2048     # rows per grid step; per-step VMEM use stays ~10 MiB
SMALL_BATCH = 512         # below this a single block is cheapest


def _cdiv(a, b):
    return -(-a // b)


def _round_up(x, m):
    return _cdiv(x, m) * m


def _leaky_relu(x):
    # max(x, slope*x) == LeakyReLU for slope in (0, 1); 2 VALU ops.
    return jnp.maximum(x, NEG_SLOPE * x)


def _layernorm(x, gamma, beta):
    # One-pass statistics (sum + sum-of-squares); stats kept in f32.
    # NOTE: if profiling shows the XLU reduce chain exposed, these two row-sums
    # can be moved to the (idle) MXU via dot(x, ones(256,1)) / dot(x*x, ones).
    inv_n = 1.0 / x.shape[-1]
    s1 = jnp.sum(x, axis=-1, keepdims=True)
    s2 = jnp.sum(x * x, axis=-1, keepdims=True)
    mu = s1 * inv_n
    var = s2 * inv_n - mu * mu
    return (x - mu) * lax.rsqrt(var + LN_EPS) * gamma + beta


def critic_kernel(sa_ref,
                  w1_ref, b1_ref, g1_ref, be1_ref,
                  w2_ref, b2_ref, g2_ref, be2_ref,
                  w3_ref, b3_ref,
                  q_ref):
    # ---- Linear 1 (exp(log_scale) already folded into W1) -----------------
    h = jnp.dot(sa_ref[...], w1_ref[...],
                preferred_element_type=jnp.float32) + b1_ref[...]
    h = _leaky_relu(h)
    h = _layernorm(h, g1_ref[...], be1_ref[...])               # (block, 256) f32
    # NOTE: LeakyReLU / LN-affine could run in packed bf16 on v6e/v7x; kept in
    # f32 so the same kernel stays safe on v5e (no bf16 VPU/EUP).

    # ---- Linear 2 ----------------------------------------------------------
    h = jnp.dot(h.astype(jnp.bfloat16), w2_ref[...],
                preferred_element_type=jnp.float32) + b2_ref[...]
    h = _leaky_relu(h)
    h = _layernorm(h, g2_ref[...], be2_ref[...])               # (block, 256) f32

    # ---- Linear 3: (1,256) x (block,256)^T -> lane-dense (1, block) --------
    qrow = lax.dot_general(
        w3_ref[...], h.astype(jnp.bfloat16),
        dimension_numbers=(((1,), (1,)), ((), ())),
        preferred_element_type=jnp.float32,
    ) + b3_ref[0, 0]                                           # (1, block)
    q_ref[...] = qrow[None]                                    # (1, 1, block)


def _pick_block(batch):
    """Rows per grid step and number of grid steps."""
    b16 = _round_up(batch, 16)                  # bf16 sublane-friendly
    if b16 <= SMALL_BATCH:
        return b16, 1                           # single block, minimal padding
    nb = max(2, _cdiv(b16, MAX_BLOCK_ROWS))     # nb >= 2 keeps both v7x TCs busy
    block = _round_up(_cdiv(b16, nb), 16)       # near-equal blocks from B itself
    nb = _cdiv(b16, block)
    return block, nb


def prepare_params(params, in_dim, in_pad):
    """Fold exp(log_scale) into a single padded W1, cast MXU operands to bf16,
    and lay w3 out as a lane-dense (1, 256) row."""
    scale = jnp.exp(params["log_scale"]).reshape(-1, 1)        # (in_dim, 1)
    w1 = params["w1"] * scale                                  # diag(scale) @ W1
    w1p = jnp.zeros((in_pad, HIDDEN), jnp.float32).at[:in_dim].set(w1)
    return dict(
        w1=w1p.astype(jnp.bfloat16),
        b1=params["b1"], g1=params["g1"], be1=params["be1"],
        w2=params["w2"].astype(jnp.bfloat16),
        b2=params["b2"], g2=params["g2"], be2=params["be2"],
        w3=params["w3"].reshape(1, HIDDEN).astype(jnp.bfloat16),
        b3=params["b3"].reshape(1, 1),
    )


@jax.jit
def critic_forward(state, action, params):
    B, S = state.shape
    A = action.shape[1]
    in_dim = S + A
    in_pad = _round_up(in_dim, 16)

    block_b, nb = _pick_block(B)
    b_pad = block_b * nb

    # Single fused concat + pad + f32->bf16 cast: kernel streams bf16 rows
    # straight into the MXU (half the HBM input traffic of f32).
    sa = jnp.concatenate([state, action], axis=1).astype(jnp.bfloat16)
    sa_p = jnp.zeros((b_pad, in_pad), jnp.bfloat16).at[:B, :in_dim].set(sa)

    p = prepare_params(params, in_dim, in_pad)

    vec_spec = pl.BlockSpec((1, HIDDEN), lambda i: (0, 0))
    in_specs = [
        pl.BlockSpec((block_b, in_pad), lambda i: (i, 0)),     # sa block (bf16)
        pl.BlockSpec((in_pad, HIDDEN), lambda i: (0, 0)),      # w1 (bf16)
        vec_spec, vec_spec, vec_spec,                          # b1, g1, be1
        pl.BlockSpec((HIDDEN, HIDDEN), lambda i: (0, 0)),      # w2 (bf16)
        vec_spec, vec_spec, vec_spec,                          # b2, g2, be2
        vec_spec,                                              # w3 (1, 256) row
        pl.BlockSpec(memory_space=pltpu.MemorySpace.SMEM),     # b3 scalar
    ]
    out_spec = pl.BlockSpec((1, 1, block_b), lambda i: (i, 0, 0))

    flops = 2 * b_pad * (in_pad * HIDDEN + HIDDEN * HIDDEN + HIDDEN)
    bytes_accessed = (
        sa_p.size * 2 + b_pad * 4                                    # activations
        + (in_pad + HIDDEN + 1) * HIDDEN * 2 + 6 * HIDDEN * 4 + 4)   # params

    out = pl.pallas_call(
        critic_kernel,
        out_shape=jax.ShapeDtypeStruct((nb, 1, block_b), jnp.float32),
        grid=(nb,),
        in_specs=in_specs,
        out_specs=out_spec,
        compiler_params=pltpu.CompilerParams(
            dimension_semantics=("parallel",),
            vmem_limit_bytes=32 * 1024 * 1024,
        ),
        cost_estimate=pl.CostEstimate(
            flops=flops, transcendentals=2 * b_pad, bytes_accessed=bytes_accessed),
    )(sa_p,
      p["w1"], p["b1"], p["g1"], p["be1"],
      p["w2"], p["b2"], p["g2"], p["be2"],
      p["w3"], p["b3"])

    # Lane-dense (nb, 1, block_b) -> (B, 1)
    return out.reshape(-1)[:B].reshape(B, 1)


def init_params(key, state_dim, action_dim):
    """Deterministic init matching the PyTorch module's shapes.
    Linear weights stored transposed to (in, out) for x @ W."""
    in_dim = state_dim + action_dim
    ks = jax.random.split(key, 6)

    def lin(kw, kb, fan_in, fan_out):
        bound = 1.0 / jnp.sqrt(fan_in)
        w = jax.random.uniform(kw, (fan_in, fan_out), jnp.float32, -bound, bound)
        b = jax.random.uniform(kb, (1, fan_out), jnp.float32, -bound, bound)
        return w, b

    w1, b1 = lin(ks[0], ks[1], in_dim, HIDDEN)
    w2, b2 = lin(ks[2], ks[3], HIDDEN, HIDDEN)
    w3, b3 = lin(ks[4], ks[5], HIDDEN, 1)

    return {
        "log_scale": jnp.zeros((1, in_dim), jnp.float32),      # ScalingLayer init
        "w1": w1, "b1": b1,
        "g1": jnp.ones((1, HIDDEN), jnp.float32), "be1": jnp.zeros((1, HIDDEN), jnp.float32),
        "w2": w2, "b2": b2,
        "g2": jnp.ones((1, HIDDEN), jnp.float32), "be2": jnp.zeros((1, HIDDEN), jnp.float32),
        "w3": w3, "b3": b3,
    }


def critic_reference(state, action, params):
    """Pure-f32 reference matching the PyTorch module semantics."""
    sa = jnp.concatenate([state, action], axis=1) * jnp.exp(params["log_scale"])
    h = _leaky_relu(sa @ params["w1"] + params["b1"])
    h = _layernorm(h, params["g1"], params["be1"])
    h = _leaky_relu(h @ params["w2"] + params["b2"])
    h = _layernorm(h, params["g2"], params["be2"])
    return h @ params["w3"] + params["b3"]


def critic_reference_matched(state, action, params):
    """Reference mirroring the kernel numerics (bf16 MXU inputs, f32 acc)."""
    B, S = state.shape
    A = action.shape[1]
    in_dim = S + A
    in_pad = _round_up(in_dim, 16)
    p = prepare_params(params, in_dim, in_pad)
    sa = jnp.concatenate([state, action], axis=1).astype(jnp.bfloat16)
    sa_p = jnp.zeros((B, in_pad), jnp.bfloat16).at[:, :in_dim].set(sa)
    h = jnp.dot(sa_p, p["w1"], preferred_element_type=jnp.float32) + p["b1"]
    h = _leaky_relu(h)
    h = _layernorm(h, p["g1"], p["be1"])
    h = jnp.dot(h.astype(jnp.bfloat16), p["w2"],
                preferred_element_type=jnp.float32) + p["b2"]
    h = _leaky_relu(h)
    h = _layernorm(h, p["g2"], p["be2"])
    return jnp.dot(h.astype(jnp.bfloat16), p["w3"].T,
                   preferred_element_type=jnp.float32) + p["b3"]


if __name__ == "__main__":
    key = jax.random.PRNGKey(0)
    k_state, k_action, k_params = jax.random.split(key, 3)

    batch, state_dim, action_dim = 8, 12, 4
    state = jax.random.normal(k_state, (batch, state_dim), jnp.float32)
    action = jax.random.normal(k_action, (batch, action_dim), jnp.float32)
    params = init_params(k_params, state_dim, action_dim)

    q = critic_forward(state, action, params)
    jax.block_until_ready(q)

    q_match = critic_reference_matched(state, action, params)
    q_f32 = critic_reference(state, action, params)

    assert q.shape == (batch, 1)
    # Tight check vs the numerics-matched reference (same bf16 rounding).
    assert jnp.allclose(q, q_match, atol=2e-3, rtol=2e-3)
    # Loose check vs the full-f32 PyTorch-semantics reference.
    assert jnp.allclose(q, q_f32, atol=5e-2, rtol=5e-2)

    print("KERNEL_OK")
</pallas_src>

<mosaic_0001>
module attributes {stable_mosaic.version = 11 : i64} {
  func.func @critic_kernel(%arg0: i32, %arg1: memref<16x16xbf16, #tpu.memory_space<vmem>>, %arg2: memref<16x256xbf16, #tpu.memory_space<vmem>>, %arg3: memref<1x256xf32, #tpu.memory_space<vmem>>, %arg4: memref<1x256xf32, #tpu.memory_space<vmem>>, %arg5: memref<1x256xf32, #tpu.memory_space<vmem>>, %arg6: memref<256x256xbf16, #tpu.memory_space<vmem>>, %arg7: memref<1x256xf32, #tpu.memory_space<vmem>>, %arg8: memref<1x256xf32, #tpu.memory_space<vmem>>, %arg9: memref<1x256xf32, #tpu.memory_space<vmem>>, %arg10: memref<1x256xbf16, #tpu.memory_space<vmem>>, %arg11: memref<1x1xf32, #tpu.memory_space<smem>>, %arg12: memref<1x1x16xf32, #tpu.memory_space<vmem>>) attributes {dimension_semantics = [#tpu.dimension_semantics<parallel>], iteration_bounds = array<i64: 1>, scalar_prefetch = 0 : i64, scratch_operands = 0 : i64, tpu.core_type = #tpu.core_type<tc>, window_params = [{transform_indices = @transform_0, window_bounds = array<i64: 16, 16>}, {pipeline_mode = #tpu.pipeline_mode<synchronous>, transform_indices = @transform_1, window_bounds = array<i64: 16, 256>}, {pipeline_mode = #tpu.pipeline_mode<synchronous>, transform_indices = @transform_2, window_bounds = array<i64: 1, 256>}, {pipeline_mode = #tpu.pipeline_mode<synchronous>, transform_indices = @transform_3, window_bounds = array<i64: 1, 256>}, {pipeline_mode = #tpu.pipeline_mode<synchronous>, transform_indices = @transform_4, window_bounds = array<i64: 1, 256>}, {pipeline_mode = #tpu.pipeline_mode<synchronous>, transform_indices = @transform_5, window_bounds = array<i64: 256, 256>}, {pipeline_mode = #tpu.pipeline_mode<synchronous>, transform_indices = @transform_6, window_bounds = array<i64: 1, 256>}, {pipeline_mode = #tpu.pipeline_mode<synchronous>, transform_indices = @transform_7, window_bounds = array<i64: 1, 256>}, {pipeline_mode = #tpu.pipeline_mode<synchronous>, transform_indices = @transform_8, window_bounds = array<i64: 1, 256>}, {pipeline_mode = #tpu.pipeline_mode<synchronous>, transform_indices = @transform_9, window_bounds = array<i64: 1, 256>}, {transform_indices = @transform_10, window_bounds = array<i64: 1, 1>}, {transform_indices = @transform_11, window_bounds = array<i64: 1, 1, 16>}]} {
    %c0 = arith.constant 0 : index
    %c0_0 = arith.constant 0 : index
    %0 = vector.load %arg1[%c0, %c0_0] : memref<16x16xbf16, #tpu.memory_space<vmem>>, vector<16x16xbf16>
    %c0_1 = arith.constant 0 : index
    %c0_2 = arith.constant 0 : index
    %1 = vector.load %arg2[%c0_1, %c0_2] : memref<16x256xbf16, #tpu.memory_space<vmem>>, vector<16x256xbf16>
    %cst = arith.constant dense<0.000000e+00> : vector<16x256xf32>
    %2 = tpu.matmul %0, %1, %cst {dimension_numbers = #tpu.dot_dimension_numbers<[1], [0], [0], [1], [0, 0, 1, 1], [], []>} : vector<16x16xbf16>, vector<16x256xbf16>, vector<16x256xf32> -> vector<16x256xf32>
    %c0_3 = arith.constant 0 : index
    %c0_4 = arith.constant 0 : index
    %3 = vector.load %arg3[%c0_3, %c0_4] : memref<1x256xf32, #tpu.memory_space<vmem>>, vector<1x256xf32>
    %4 = vector.broadcast %3 : vector<1x256xf32> to vector<16x256xf32>
    %5 = arith.addf %2, %4 : vector<16x256xf32>
    %cst_5 = arith.constant 0.00999999977 : f32
    %6 = vector.broadcast %cst_5 : f32 to vector<16x256xf32>
    %7 = arith.mulf %6, %5 : vector<16x256xf32>
    %8 = arith.maximumf %5, %7 : vector<16x256xf32>
    %c0_6 = arith.constant 0 : index
    %c0_7 = arith.constant 0 : index
    %9 = vector.load %arg4[%c0_6, %c0_7] : memref<1x256xf32, #tpu.memory_space<vmem>>, vector<1x256xf32>
    %c0_8 = arith.constant 0 : index
    %c0_9 = arith.constant 0 : index
    %10 = vector.load %arg5[%c0_8, %c0_9] : memref<1x256xf32, #tpu.memory_space<vmem>>, vector<1x256xf32>
    %cst_10 = arith.constant dense<0.000000e+00> : vector<16xf32>
    %11 = vector.multi_reduction <add>, %8, %cst_10 [1] : vector<16x256xf32> to vector<16xf32>
    %12 = vector.shape_cast %11 : vector<16xf32> to vector<16x1xf32>
    %13 = arith.mulf %8, %8 : vector<16x256xf32>
    %cst_11 = arith.constant dense<0.000000e+00> : vector<16xf32>
    %14 = vector.multi_reduction <add>, %13, %cst_11 [1] : vector<16x256xf32> to vector<16xf32>
    %15 = vector.shape_cast %14 : vector<16xf32> to vector<16x1xf32>
    %cst_12 = arith.constant 3.906250e-03 : f32
    %16 = vector.broadcast %cst_12 : f32 to vector<16x1xf32>
    %17 = arith.mulf %12, %16 : vector<16x1xf32>
    %cst_13 = arith.constant 3.906250e-03 : f32
    %18 = vector.broadcast %cst_13 : f32 to vector<16x1xf32>
    %19 = arith.mulf %15, %18 : vector<16x1xf32>
    %20 = arith.mulf %17, %17 : vector<16x1xf32>
    %21 = arith.subf %19, %20 : vector<16x1xf32>
    %22 = vector.broadcast %17 : vector<16x1xf32> to vector<16x256xf32>
    %23 = arith.subf %8, %22 : vector<16x256xf32>
    %cst_14 = arith.constant 9.99999974E-6 : f32
    %24 = vector.broadcast %cst_14 : f32 to vector<16x1xf32>
    %25 = arith.addf %21, %24 : vector<16x1xf32>
    %26 = math.rsqrt %25 : vector<16x1xf32>
    %27 = vector.broadcast %26 : vector<16x1xf32> to vector<16x256xf32>
    %28 = arith.mulf %23, %27 : vector<16x256xf32>
    %29 = vector.broadcast %9 : vector<1x256xf32> to vector<16x256xf32>
    %30 = arith.mulf %28, %29 : vector<16x256xf32>
    %31 = vector.broadcast %10 : vector<1x256xf32> to vector<16x256xf32>
    %32 = arith.addf %30, %31 : vector<16x256xf32>
    %33 = arith.truncf %32 : vector<16x256xf32> to vector<16x256xbf16>
    %c0_15 = arith.constant 0 : index
    %c0_16 = arith.constant 0 : index
    %34 = vector.load %arg6[%c0_15, %c0_16] : memref<256x256xbf16, #tpu.memory_space<vmem>>, vector<256x256xbf16>
    %cst_17 = arith.constant dense<0.000000e+00> : vector<16x256xf32>
    %35 = tpu.matmul %33, %34, %cst_17 {dimension_numbers = #tpu.dot_dimension_numbers<[1], [0], [0], [1], [0, 0, 1, 1], [], []>} : vector<16x256xbf16>, vector<256x256xbf16>, vector<16x256xf32> -> vector<16x256xf32>
    %c0_18 = arith.constant 0 : index
    %c0_19 = arith.constant 0 : index
    %36 = vector.load %arg7[%c0_18, %c0_19] : memref<1x256xf32, #tpu.memory_space<vmem>>, vector<1x256xf32>
    %37 = vector.broadcast %36 : vector<1x256xf32> to vector<16x256xf32>
    %38 = arith.addf %35, %37 : vector<16x256xf32>
    %cst_20 = arith.constant 0.00999999977 : f32
    %39 = vector.broadcast %cst_20 : f32 to vector<16x256xf32>
    %40 = arith.mulf %39, %38 : vector<16x256xf32>
    %41 = arith.maximumf %38, %40 : vector<16x256xf32>
    %c0_21 = arith.constant 0 : index
    %c0_22 = arith.constant 0 : index
    %42 = vector.load %arg8[%c0_21, %c0_22] : memref<1x256xf32, #tpu.memory_space<vmem>>, vector<1x256xf32>
    %c0_23 = arith.constant 0 : index
    %c0_24 = arith.constant 0 : index
    %43 = vector.load %arg9[%c0_23, %c0_24] : memref<1x256xf32, #tpu.memory_space<vmem>>, vector<1x256xf32>
    %cst_25 = arith.constant dense<0.000000e+00> : vector<16xf32>
    %44 = vector.multi_reduction <add>, %41, %cst_25 [1] : vector<16x256xf32> to vector<16xf32>
    %45 = vector.shape_cast %44 : vector<16xf32> to vector<16x1xf32>
    %46 = arith.mulf %41, %41 : vector<16x256xf32>
    %cst_26 = arith.constant dense<0.000000e+00> : vector<16xf32>
    %47 = vector.multi_reduction <add>, %46, %cst_26 [1] : vector<16x256xf32> to vector<16xf32>
    %48 = vector.shape_cast %47 : vector<16xf32> to vector<16x1xf32>
    %cst_27 = arith.constant 3.906250e-03 : f32
    %49 = vector.broadcast %cst_27 : f32 to vector<16x1xf32>
    %50 = arith.mulf %45, %49 : vector<16x1xf32>
    %cst_28 = arith.constant 3.906250e-03 : f32
    %51 = vector.broadcast %cst_28 : f32 to vector<16x1xf32>
    %52 = arith.mulf %48, %51 : vector<16x1xf32>
    %53 = arith.mulf %50, %50 : vector<16x1xf32>
    %54 = arith.subf %52, %53 : vector<16x1xf32>
    %55 = vector.broadcast %50 : vector<16x1xf32> to vector<16x256xf32>
    %56 = arith.subf %41, %55 : vector<16x256xf32>
    %cst_29 = arith.constant 9.99999974E-6 : f32
    %57 = vector.broadcast %cst_29 : f32 to vector<16x1xf32>
    %58 = arith.addf %54, %57 : vector<16x1xf32>
    %59 = math.rsqrt %58 : vector<16x1xf32>
    %60 = vector.broadcast %59 : vector<16x1xf32> to vector<16x256xf32>
    %61 = arith.mulf %56, %60 : vector<16x256xf32>
    %62 = vector.broadcast %42 : vector<1x256xf32> to vector<16x256xf32>
    %63 = arith.mulf %61, %62 : vector<16x256xf32>
    %64 = vector.broadcast %43 : vector<1x256xf32> to vector<16x256xf32>
    %65 = arith.addf %63, %64 : vector<16x256xf32>
    %c0_30 = arith.constant 0 : index
    %c0_31 = arith.constant 0 : index
    %66 = vector.load %arg10[%c0_30, %c0_31] : memref<1x256xbf16, #tpu.memory_space<vmem>>, vector<1x256xbf16>
    %67 = arith.truncf %65 : vector<16x256xf32> to vector<16x256xbf16>
    %cst_32 = arith.constant dense<0.000000e+00> : vector<1x16xf32>
    %68 = tpu.matmul %66, %67, %cst_32 {dimension_numbers = #tpu.dot_dimension_numbers<[1], [1], [0], [0], [0, 0, 1, 0], [], []>} : vector<1x256xbf16>, vector<16x256xbf16>, vector<1x16xf32> -> vector<1x16xf32>
    %c0_33 = arith.constant 0 : index
    %c0_34 = arith.constant 0 : index
    %69 = memref.load %arg11[%c0_33, %c0_34] : memref<1x1xf32, #tpu.memory_space<smem>>
    %70 = vector.broadcast %69 : f32 to vector<1x16xf32>
    %71 = arith.addf %68, %70 : vector<1x16xf32>
    %72 = vector.shape_cast %71 : vector<1x16xf32> to vector<1x1x16xf32>
    %c0_35 = arith.constant 0 : index
    %c0_36 = arith.constant 0 : index
    %c0_37 = arith.constant 0 : index
    %73 = vector.load %arg12[%c0_35, %c0_36, %c0_37] : memref<1x1x16xf32, #tpu.memory_space<vmem>>, vector<1x1x16xf32>
    tpu.vector_store %arg12[%c0_35, %c0_36, %c0_37], %72 {strides = array<i32>} : memref<1x1x16xf32, #tpu.memory_space<vmem>>, vector<1x1x16xf32>,
    return
  }
  func.func @transform_0(%arg0: i32) -> (i32, i32) {
    %c0_i32 = arith.constant 0 : i32
    %c0_i32_0 = arith.constant 0 : i32
    return %arg0, %c0_i32 : i32, i32
  }
  func.func @transform_1(%arg0: i32) -> (i32, i32) {
    %c0_i32 = arith.constant 0 : i32
    %c0_i32_0 = arith.constant 0 : i32
    %c0_i32_1 = arith.constant 0 : i32
    return %c0_i32, %c0_i32_0 : i32, i32
  }
  func.func @transform_2(%arg0: i32) -> (i32, i32) {
    %c0_i32 = arith.constant 0 : i32
    %c0_i32_0 = arith.constant 0 : i32
    %c0_i32_1 = arith.constant 0 : i32
    return %c0_i32, %c0_i32_0 : i32, i32
  }
  func.func @transform_3(%arg0: i32) -> (i32, i32) {
    %c0_i32 = arith.constant 0 : i32
    %c0_i32_0 = arith.constant 0 : i32
    %c0_i32_1 = arith.constant 0 : i32
    return %c0_i32, %c0_i32_0 : i32, i32
  }
  func.func @transform_4(%arg0: i32) -> (i32, i32) {
    %c0_i32 = arith.constant 0 : i32
    %c0_i32_0 = arith.constant 0 : i32
    %c0_i32_1 = arith.constant 0 : i32
    return %c0_i32, %c0_i32_0 : i32, i32
  }
  func.func @transform_5(%arg0: i32) -> (i32, i32) {
    %c0_i32 = arith.constant 0 : i32
    %c0_i32_0 = arith.constant 0 : i32
    %c0_i32_1 = arith.constant 0 : i32
    return %c0_i32, %c0_i32_0 : i32, i32
  }
  func.func @transform_6(%arg0: i32) -> (i32, i32) {
    %c0_i32 = arith.constant 0 : i32
    %c0_i32_0 = arith.constant 0 : i32
    %c0_i32_1 = arith.constant 0 : i32
    return %c0_i32, %c0_i32_0 : i32, i32
  }
  func.func @transform_7(%arg0: i32) -> (i32, i32) {
    %c0_i32 = arith.constant 0 : i32
    %c0_i32_0 = arith.constant 0 : i32
    %c0_i32_1 = arith.constant 0 : i32
    return %c0_i32, %c0_i32_0 : i32, i32
  }
  func.func @transform_8(%arg0: i32) -> (i32, i32) {
    %c0_i32 = arith.constant 0 : i32
    %c0_i32_0 = arith.constant 0 : i32
    %c0_i32_1 = arith.constant 0 : i32
    return %c0_i32, %c0_i32_0 : i32, i32
  }
  func.func @transform_9(%arg0: i32) -> (i32, i32) {
    %c0_i32 = arith.constant 0 : i32
    %c0_i32_0 = arith.constant 0 : i32
    %c0_i32_1 = arith.constant 0 : i32
    return %c0_i32, %c0_i32_0 : i32, i32
  }
  func.func @transform_10(%arg0: i32) -> (i32, i32) {
    %c0_i32 = arith.constant 0 : i32
    %c0_i32_0 = arith.constant 0 : i32
    %c0_i32_1 = arith.constant 0 : i32
    return %c0_i32, %c0_i32_0 : i32, i32
  }
  func.func @transform_11(%arg0: i32) -> (i32, i32, i32) {
    %c0_i32 = arith.constant 0 : i32
    %c0_i32_0 = arith.constant 0 : i32
    %c0_i32_1 = arith.constant 0 : i32
    return %arg0, %c0_i32, %c0_i32_0 : i32, i32, i32
  }
}

</mosaic_0001>

<bundles_post_ra>
// kernel: critic_forward.1
= control target key start
LH: loop header
LB: loop body
LE: loop exit
PB: predicated region body
PF: predicated region fallthrough
CT: control target
= control target key end

     0   :  { %v694_v1 = vmov 0   ;;  %vm71_vm0 = vcmask 130048   ;;  %v46_v20 = vlaneseq  ;;  %vm589_vm1 = vcmask 122880   ;;  %s933_s1 = inlined_call_operand.vmem [shape: bf16[16,256], index: 1, kind: input, shape index: {}]   ;;  %s934_s0 = inlined_call_operand.vmem [shape: bf16[16,16], index: 0, kind: input, shape index: {}]   ;;  %s935_s5 = inlined_call_operand.vmem [shape: bf16[256,256], index: 5, kind: input, shape index: {}]   ;;  %s936_s2 = inlined_call_operand.vmem [shape: f32[1,256], index: 2, kind: input, shape index: {}]   ;;  %s937_s3 = inlined_call_operand.vmem [shape: f32[1,256], index: 3, kind: input, shape index: {}]   ;;  %s938_s4 = inlined_call_operand.vmem [shape: f32[1,256], index: 4, kind: input, shape index: {}]   ;;  %s939_s6 = inlined_call_operand.vmem [shape: f32[1,256], index: 6, kind: input, shape index: {}]   ;;  %s940_s9 = inlined_call_operand.vmem [shape: bf16[1,256], index: 9, kind: input, shape index: {}]   ;;  %s941_s7 = inlined_call_operand.vmem [shape: f32[1,256], index: 7, kind: input, shape index: {}]   ;;  %s942_s8 = inlined_call_operand.vmem [shape: f32[1,256], index: 8, kind: input, shape index: {}]   ;;  %s943_s10 = inlined_call_operand.<no memory space> [shape: f32[1,1], index: 10, kind: input, shape index: {}]   ;;  %s944_s11 = inlined_call_operand.vmem [shape: f32[1,1,16], index: 11, kind: output, shape index: {}]  }
   0x1   :  { %v634_v0 = vld [vmem:[%s933_s1 + $0x4] ss:$8 sps:$4 sm:$0xff]   ;;  %107 = vmatprep.mubr.bf16.mxu0 %v694_v1  ;;  %v636_v2 = vld [vmem:[%s933_s1] ss:$8 sps:$4 sm:$0xff]   ;;  %v641_v6 = vld [vmem:[%s935_s5 + $0x14] ss:$8 sps:$4 sm:$0xff]  }
   0x2   :  { %75 = vmatprep.subr.bf16.mxu0 %v634_v0  ;;  %v637_v3 = vld [vmem:[%s934_s0] sm:$0xff]   ;;  %v643_v7 = vld [vmem:[%s935_s5 + $0x10] ss:$8 sps:$4 sm:$0xff]   ;;  %v647_v10 = vld [vmem:[%s935_s5 + $0x34] ss:$8 sps:$4 sm:$0xff]   ;;  %v813_v21 = vshrl.u32 %v46_v20, 7 }
   0x3   :  { %76 = vmatpush1.bf16.msra.mxu0 %v636_v2  ;;  %v638_v4 = vld [vmem:[%s935_s5 + $0x4] ss:$8 sps:$4 sm:$0xff]   ;;  %v640_v5 = vld [vmem:[%s935_s5] ss:$8 sps:$4 sm:$0xff]   ;;  %v649_v11 = vld [vmem:[%s935_s5 + $0x30] ss:$8 sps:$4 sm:$0xff]  }
   0x4   :  { %400 = vmatprep.subr.bf16.mxu1 %v638_v4  ;;  %v644_v8 = vld [vmem:[%s935_s5 + $0x24] ss:$8 sps:$4 sm:$0xff]   ;;  %v646_v9 = vld [vmem:[%s935_s5 + $0x20] ss:$8 sps:$4 sm:$0xff]   ;;  %v653_v14 = vld [vmem:[%s935_s5 + $0x54] ss:$8 sps:$4 sm:$0xff]  }
   0x5   :  { %401 = vmatpush1.bf16.msra.mxu1 %v640_v5  ;;  %v650_v12 = vld [vmem:[%s935_s5 + $0x44] ss:$8 sps:$4 sm:$0xff]   ;;  %v652_v13 = vld [vmem:[%s935_s5 + $0x40] ss:$8 sps:$4 sm:$0xff]   ;;  %v655_v15 = vld [vmem:[%s935_s5 + $0x50] ss:$8 sps:$4 sm:$0xff]  }
   0x6   :  { %598 = vmatmul.mubr.msk.bf16.vlgmr.msra.gmra.mrb[0].mxu0 %vm71_vm0, %v637_v3  ;;  %402 = vmatprep.subr.bf16.mxu1 %v641_v6  ;;  %v656_v16 = vld [vmem:[%s935_s5 + $0x64] ss:$8 sps:$4 sm:$0xff]   ;;  %v658_v17 = vld [vmem:[%s935_s5 + $0x60] ss:$8 sps:$4 sm:$0xff]   ;;  %v659_v18 = vld [vmem:[%s935_s5 + $0x74] ss:$8 sps:$4 sm:$0xff]  }
   0x7   :  { %v661_v19 = vld [vmem:[%s935_s5 + $0x70] ss:$8 sps:$4 sm:$0xff]   ;;  %v816_v22 = vsub.s32 0, %v813_v21  ;;  %v44_v23 = vld [vmem:[%s936_s2] sm:$0x3]  ;;  %v822_v24 = vsub.s32 1, %v813_v21 }
   0x8   :  { %v662_v51 = vld [vmem:[%s935_s5 + $0x84] ss:$8 sps:$4 sm:$0xff]   ;;  %v664_v52 = vld [vmem:[%s935_s5 + $0x80] ss:$8 sps:$4 sm:$0xff]   ;;  %v665_v53 = vld [vmem:[%s935_s5 + $0x94] ss:$8 sps:$4 sm:$0xff]  }
   0x9   :  { %403 = vmatpush1.bf16.msra.mxu1 %v643_v7  ;;  %v49_v25 = vrot.slane %v44_v23, %v816_v22  ;;  %v53_v26 = vrot.slane %v44_v23, %v822_v24  ;;  %v667_v54 = vld [vmem:[%s935_s5 + $0x90] ss:$8 sps:$4 sm:$0xff]   ;;  %v668_v55 = vld [vmem:[%s935_s5 + $0xa4] ss:$8 sps:$4 sm:$0xff]   ;;  %v670_v56 = vld [vmem:[%s935_s5 + $0xa0] ss:$8 sps:$4 sm:$0xff]  }
   0xa   :  { %404 = vmatprep.subr.bf16.mxu1 %v644_v8  ;;  %v671_v57 = vld [vmem:[%s935_s5 + $0xb4] ss:$8 sps:$4 sm:$0xff]   ;;  %v673_v58 = vld [vmem:[%s935_s5 + $0xb0] ss:$8 sps:$4 sm:$0xff]   ;;  %v674_v59 = vld [vmem:[%s935_s5 + $0xc4] ss:$8 sps:$4 sm:$0xff]  }
   0xb   :  { %v676_v60 = vld [vmem:[%s935_s5 + $0xc0] ss:$8 sps:$4 sm:$0xff]   ;;  %v677_v61 = vld [vmem:[%s935_s5 + $0xd4] ss:$8 sps:$4 sm:$0xff]   ;;  %v679_v62 = vld [vmem:[%s935_s5 + $0xd0] ss:$8 sps:$4 sm:$0xff]  }
   0xc   :  { %v680_v63 = vld [vmem:[%s935_s5 + $0xe4] ss:$8 sps:$4 sm:$0xff]   ;;  %v682_v0 = vld [vmem:[%s935_s5 + $0xe0] ss:$8 sps:$4 sm:$0xff]   ;;  %v683_v1 = vld [vmem:[%s935_s5 + $0xf4] ss:$8 sps:$4 sm:$0xff]  }
   0xd   :  { %405 = vmatpush1.bf16.msra.mxu1 %v646_v9  ;;  %v685_v2 = vld [vmem:[%s935_s5 + $0xf0] ss:$8 sps:$4 sm:$0xff]   ;;  %v127_v23 = vld [vmem:[%s938_s4] sm:$0x3] }
   0xe   :  { %406 = vmatprep.subr.bf16.mxu1 %v647_v10 }
  0x11   :  { %407 = vmatpush1.bf16.msra.mxu1 %v649_v11 }
  0x12   :  { %408 = vmatprep.subr.bf16.mxu1 %v650_v12 }
  0x15   :  { %409 = vmatpush1.bf16.msra.mxu1 %v652_v13 }
  0x16   :  { %410 = vmatprep.subr.bf16.mxu1 %v653_v14 }
  0x19   :  { %411 = vmatpush1.bf16.msra.mxu1 %v655_v15 }
  0x1a   :  { %412 = vmatprep.subr.bf16.mxu1 %v656_v16 }
  0x1d   :  { %413 = vmatpush1.bf16.msra.mxu1 %v658_v17  ;;  %v126_v17 = vld [vmem:[%s937_s3] sm:$0x3] }
  0x1e   :  { %414 = vmatprep.subr.bf16.mxu1 %v659_v18 }
  0x21   :  { %415 = vmatpush1.bf16.msra.mxu1 %v661_v19 }
  0x22   :  { %416 = vmatprep.subr.bf16.mxu1 %v662_v51 }
  0x25   :  { %417 = vmatpush1.bf16.msra.mxu1 %v664_v52 }
  0x26   :  { %418 = vmatprep.subr.bf16.mxu1 %v665_v53 }
  0x29   :  { %419 = vmatpush1.bf16.msra.mxu1 %v667_v54 }
  0x2a   :  { %420 = vmatprep.subr.bf16.mxu1 %v668_v55 }
  0x2d   :  { %421 = vmatpush1.bf16.msra.mxu1 %v670_v56 }
  0x2e   :  { %422 = vmatprep.subr.bf16.mxu1 %v671_v57 }
  0x31   :  { %423 = vmatpush1.bf16.msra.mxu1 %v673_v58 }
  0x32   :  { %424 = vmatprep.subr.bf16.mxu1 %v674_v59 }
  0x35   :  { %425 = vmatpush1.bf16.msra.mxu1 %v676_v60 }
  0x36   :  { %426 = vmatprep.subr.bf16.mxu1 %v677_v61 }
  0x39   :  { %427 = vmatpush1.bf16.msra.mxu1 %v679_v62 }
  0x3a   :  { %428 = vmatprep.subr.bf16.mxu1 %v680_v63 }
  0x3d   :  { %429 = vmatpush1.bf16.msra.mxu1 %v682_v0 }
  0x3e   :  { %430 = vmatprep.subr.bf16.mxu1 %v683_v1 }
  0x41   :  { %431 = vmatpush1.bf16.msra.mxu1 %v685_v2 }
  0xd9   :  { %v109_v27 = vpop.f32.mrb[0].mxu0 }
  0xda   :  { %v110_v28 = vadd.f32 %v109_v27, %v49_v25  ;;  %v111_v29 = vpop.f32.mrb[1].mxu0  ;;  %v172_v27 = vrot.slane %v126_v17, %v822_v24 }
  0xdb   :  { %v112_v30 = vadd.f32 %v111_v29, %v53_v26  ;;  %v113_v31 = vpop.f32.mrb[2].mxu0 }
  0xdc   :  { %v118_v32 = vmul.f32 0.01, %v110_v28  ;;  %v114_v33 = vadd.f32 %v113_v31, %v49_v25  ;;  %v115_v34 = vpop.f32.mrb[3].mxu0 }
  0xdd   :  { %v119_v35 = vmul.f32 0.01, %v112_v30  ;;  %v116_v36 = vadd.f32 %v115_v34, %v53_v26  ;;  %v168_v26 = vrot.slane %v126_v17, %v816_v22 }
  0xde   :  { %v826_v37 = vmax.f32 %v110_v28, %v118_v32  ;;  %v120_v38 = vmul.f32 0.01, %v114_v33  ;;  %v183_v32 = vrot.slane %v127_v23, %v816_v22 }
  0xdf   :  { %v828_v39 = vmax.f32 %v112_v30, %v119_v35  ;;  %v121_v40 = vmul.f32 0.01, %v116_v36 }
  0xe0   :  { %v830_v41 = vmax.f32 %v114_v33, %v120_v38  ;;  %v134_v42 = vmul.f32 %v826_v37, %v826_v37  ;;  %v187_v33 = vrot.slane %v127_v23, %v822_v24 }
  0xe1   :  { %v834_v43 = vmax.f32 %v116_v36, %v121_v40  ;;  %v128_v44 = vadd.f32 %v828_v39, %v826_v37  ;;  %v135_v45 = vmul.f32 %v828_v39, %v828_v39 }
  0xe2   :  { %v136_v47 = vmul.f32 %v830_v41, %v830_v41 }
  0xe3   :  { %129 = vadd.xlane.f32.xlu0 %v128_v44  ;;  %v138_v46 = vadd.f32 %v135_v45, %v134_v42  ;;  %v137_v48 = vmul.f32 %v834_v43, %v834_v43  ;;  %v131_v49 = vadd.f32 %v834_v43, %v830_v41 }
  0xe5   :  { %139 = vadd.xlane.f32.xlu1 %v138_v46  ;;  %v141_v50 = vadd.f32 %v137_v48, %v136_v47 }
  0xe7   :  { %132 = vadd.xlane.f32.xlu0 %v131_v49 }
  0xe9   :  { %142 = vadd.xlane.f32.xlu1 %v141_v50 }
 0x170   :  { %v130_v3 = vpop.xlane.xlu0 %129 }
 0x171   :  { %v144_v4 = vmul.f32 0.00390625, %v130_v3 }
 0x172   :  { %v140_v5 = vpop.xlane.xlu1 %139 }
 0x173   :  { %v146_v6 = vmul.f32 0.00390625, %v140_v5  ;;  %v148_v7 = vmul.f32 %v144_v4, %v144_v4  ;;  %v152_v19 = vsub.f32 %v826_v37, %v144_v4  ;;  %v153_v20 = vsub.f32 %v828_v39, %v144_v4 }
 0x174   :  { %v133_v8 = vpop.xlane.xlu0 %132 }
 0x175   :  { %v150_v9 = vsub.f32 %v146_v6, %v148_v7  ;;  %v145_v10 = vmul.f32 0.00390625, %v133_v8 }
 0x176   :  { %v143_v11 = vpop.xlane.xlu1 %142 }
 0x177   :  { %v156_v12 = vadd.f32 1e-05, %v150_v9  ;;  %v147_v13 = vmul.f32 0.00390625, %v143_v11  ;;  %v149_v14 = vmul.f32 %v145_v10, %v145_v10  ;;  %v154_v29 = vsub.f32 %v830_v41, %v145_v10  ;;  %v228_v41 = vld [vmem:[%s939_s6] sm:$0x3] }
 0x178   :  { %v155_v30 = vsub.f32 %v834_v43, %v145_v10  ;;  %v233_v43 = vrot.slane %v228_v41, %v816_v22  ;;  %v237_v48 = vrot.slane %v228_v41, %v822_v24  ;;  %v695_v9 = vmov 1966171168  }
 0x179   :  { %686 = vrsqrt.f32 %v156_v12  ;;  %v151_v15 = vsub.f32 %v147_v13, %v149_v14  ;;  %v534_v10 = vunpack.c.l.s4 %v695_v9  ;;  %v631_v12 = vld.sshfl [vmem:[%s940_s9] sm:$0x11 pattern:$0x75316420] }
 0x17a   :  { %v532_v13 = vcombine.high %v631_v12, %v631_v12 }
 0x17b   :  { %v157_v16 = vadd.f32 1e-05, %v151_v15  ;;  %v535_v11 = vunpack.c.0.s8 %v534_v10 }
 0x17d   :  { %688 = vrsqrt.f32 %v157_v16  ;;  %v538_v14 = vsub.s32 %v535_v11, %v813_v21  ;;  %v451_v21 = vld [vmem:[%s941_s7] sm:$0x3] }
 0x17f   :  { %v546_v15 = vrot.slane %v532_v13, %v538_v14  ;;  %v539_v16 = vrot.slane %v631_v12, %v538_v14 }
 0x181   :  { %581 = vmatprep.mubr.bf16.mxu0 %v546_v15 }
 0x183   :  { %v687_v18 = vpop.eup %686 }
 0x184   :  { %v161_v25 = vmul.f32 %v687_v18, %v153_v20  ;;  %v160_v28 = vmul.f32 %v687_v18, %v152_v19 }
 0x186   :  { %v176_v35 = vmul.f32 %v172_v27, %v161_v25  ;;  %v175_v37 = vmul.f32 %v168_v26, %v160_v28 }
 0x187   :  { %v689_v31 = vpop.eup %688 }
 0x188   :  { %v163_v34 = vmul.f32 %v689_v31, %v155_v30  ;;  %v162_v36 = vmul.f32 %v689_v31, %v154_v29  ;;  %v191_v40 = vadd.f32 %v187_v33, %v176_v35  ;;  %v190_v44 = vadd.f32 %v183_v32, %v175_v37 }
 0x189   :  { %v493_v37 = vrot.slane %v451_v21, %v816_v22 }
 0x18a   :  { %v178_v38 = vmul.f32 %v172_v27, %v163_v34  ;;  %v177_v39 = vmul.f32 %v168_v26, %v162_v36  ;;  %v452_v36 = vld [vmem:[%s942_s8] sm:$0x3] }
 0x18b   :  { %v512_v41 = vrot.slane %v452_v36, %v822_v24 }
 0x18c   :  { %v193_v42 = vadd.f32 %v187_v33, %v178_v38  ;;  %v192_v45 = vadd.f32 %v183_v32, %v177_v39  ;;  %v497_v38 = vrot.slane %v451_v21, %v822_v24 }
 0x18e   :  { %v195_v46 = vpack.c.bf16 %v193_v42, %v191_v40  ;;  %v194_v47 = vpack.c.bf16 %v192_v45, %v190_v44 }
 0x190   :  { %432 = vmatprep.mubr.bf16.mxu1 %v195_v46 }
 0x191   :  { %433 = vmatmul.mubr.bf16.vlgmr.msra.gmra.mrb[0].mxu1 %v194_v47  ;;  %v508_v47 = vrot.slane %v452_v36, %v816_v22  ;;  %v523_v22 = vstv %s943_s10 }
 0x264   :  { %v434_v49 = vpop.f32.mrb[0].mxu1 }
 0x265   :  { %v435_v50 = vadd.f32 %v434_v49, %v233_v43  ;;  %v436_v51 = vpop.f32.mrb[1].mxu1 }
 0x266   :  { %v437_v52 = vadd.f32 %v436_v51, %v237_v48  ;;  %v438_v53 = vpop.f32.mrb[2].mxu1 }
 0x267   :  { %v443_v54 = vmul.f32 0.01, %v435_v50  ;;  %v439_v55 = vadd.f32 %v438_v53, %v233_v43  ;;  %v440_v56 = vpop.f32.mrb[3].mxu1 }
 0x268   :  { %v444_v57 = vmul.f32 0.01, %v437_v52  ;;  %v441_v58 = vadd.f32 %v440_v56, %v237_v48 }
 0x269   :  { %v447_v59 = vmax.f32 %v435_v50, %v443_v54  ;;  %v445_v60 = vmul.f32 0.01, %v439_v55 }
 0x26a   :  { %v448_v61 = vmax.f32 %v437_v52, %v444_v57  ;;  %v446_v62 = vmul.f32 0.01, %v441_v58 }
 0x26b   :  { %v449_v63 = vmax.f32 %v439_v55, %v445_v60  ;;  %v459_v2 = vmul.f32 %v447_v59, %v447_v59 }
 0x26c   :  { %v450_v0 = vmax.f32 %v441_v58, %v446_v62  ;;  %v453_v1 = vadd.f32 %v448_v61, %v447_v59  ;;  %v460_v3 = vmul.f32 %v448_v61, %v448_v61 }
 0x26d   :  { %v461_v5 = vmul.f32 %v449_v63, %v449_v63 }
 0x26e   :  { %454 = vadd.xlane.f32.xlu0 %v453_v1  ;;  %v456_v4 = vadd.f32 %v450_v0, %v449_v63  ;;  %v462_v6 = vmul.f32 %v450_v0, %v450_v0  ;;  %v463_v7 = vadd.f32 %v460_v3, %v459_v2 }
 0x270   :  { %457 = vadd.xlane.f32.xlu1 %v456_v4  ;;  %v466_v8 = vadd.f32 %v462_v6, %v461_v5 }
 0x272   :  { %464 = vadd.xlane.f32.xlu0 %v463_v7 }
 0x274   :  { %467 = vadd.xlane.f32.xlu1 %v466_v8 }
 0x2fb   :  { %v455_v17 = vpop.xlane.xlu0 %454 }
 0x2fc   :  { %v469_v18 = vmul.f32 0.00390625, %v455_v17 }
 0x2fd   :  { %v458_v19 = vpop.xlane.xlu1 %457 }
 0x2fe   :  { %v470_v20 = vmul.f32 0.00390625, %v458_v19  ;;  %v473_v25 = vmul.f32 %v469_v18, %v469_v18  ;;  %v477_v34 = vsub.f32 %v447_v59, %v469_v18  ;;  %v478_v35 = vsub.f32 %v448_v61, %v469_v18 }
 0x2ff   :  { %v465_v23 = vpop.xlane.xlu0 %464 }
 0x300   :  { %v471_v26 = vmul.f32 0.00390625, %v465_v23  ;;  %v474_v29 = vmul.f32 %v470_v20, %v470_v20  ;;  %v479_v40 = vsub.f32 %v449_v63, %v470_v20  ;;  %v480_v42 = vsub.f32 %v450_v0, %v470_v20 }
 0x301   :  { %v468_v27 = vpop.xlane.xlu1 %467 }
 0x302   :  { %v475_v28 = vsub.f32 %v471_v26, %v473_v25  ;;  %v472_v30 = vmul.f32 0.00390625, %v468_v27 }
 0x304   :  { %v481_v31 = vadd.f32 1e-05, %v475_v28  ;;  %v476_v32 = vsub.f32 %v472_v30, %v474_v29 }
 0x306   :  { %690 = vrsqrt.f32 %v481_v31  ;;  %v482_v33 = vadd.f32 1e-05, %v476_v32 }
 0x308   :  { %692 = vrsqrt.f32 %v482_v33 }
 0x310   :  { %v691_v39 = vpop.eup %690 }
 0x311   :  { %v486_v44 = vmul.f32 %v691_v39, %v478_v35  ;;  %v485_v45 = vmul.f32 %v691_v39, %v477_v34 }
 0x312   :  { %v693_v46 = vpop.eup %692 }
 0x313   :  { %v488_v43 = vmul.f32 %v693_v46, %v480_v42  ;;  %v501_v48 = vmul.f32 %v497_v38, %v486_v44  ;;  %v487_v49 = vmul.f32 %v693_v46, %v479_v40  ;;  %v500_v50 = vmul.f32 %v493_v37, %v485_v45 }
 0x315   :  { %v503_v51 = vmul.f32 %v497_v38, %v488_v43  ;;  %v502_v52 = vmul.f32 %v493_v37, %v487_v49  ;;  %v516_v53 = vadd.f32 %v512_v41, %v501_v48  ;;  %v515_v55 = vadd.f32 %v508_v47, %v500_v50 }
 0x317   :  { %v518_v54 = vadd.f32 %v512_v41, %v503_v51  ;;  %v517_v56 = vadd.f32 %v508_v47, %v502_v52 }
 0x319   :  { %v521_v57 = vpack.c.bf16 %v518_v54, %v516_v53  ;;  %v520_v58 = vpack.c.bf16 %v517_v56, %v515_v55 }
 0x31b   :  { %549 = vmatprep.subr.bf16.mxu0 %v521_v57 }
 0x31c   :  { %550 = vmatpush1.bf16.xpose.msra.mxu0 %v520_v58 }
 0x323   :  { %582 = vmatmul.mubr.bf16.vlgmr.msra.gmra.mrb[4].mxu0 %v539_v16 }
 0x3f6   :  { %v583_v24 = vpop.f32.mrb[4].mxu0 }
 0x3f7   :  { %v584_v59 = vadd.f32 %v583_v24, %v523_v22  ;;  %v585_v60 = vpop.f32.mrb[5].mxu0 }
 0x3f8   :  { %v586_v61 = vpop.f32.mrb[6].mxu0 }
 0x3f9   :  { %590 = vst.msk [vmem:[%s944_s11] sm:$0x1] %vm589_vm1, %v584_v59  ;;  %v587_v62 = vpop.f32.mrb[7].mxu0 }

</bundles_post_ra>
